<compile_context>
chip_gen: v7x
topology: tpu7x:2x2x1
jax: 0.10.0
libtpu: 0.0.40
codegen_flags: <defaults>
</compile_context>

<pallas_src>
import jax
import jax.numpy as jnp
import numpy as np
from jax.experimental import pallas as pl
from jax.experimental.pallas import tpu as pltpu

_MIB = 1024 * 1024


# ----------------------------------------------------------------------------
# Pallas kernel: out = relu(relu(x @ w1) @ w2)   (one (tM, C) row tile / step)
# ----------------------------------------------------------------------------
def _adapter_kernel(x_ref, w1_ref, w2_ref, o_ref):
    # First Linear (bias=False) + ReLU -- f32 accumulation on the MXU.
    h = jnp.dot(x_ref[...], w1_ref[...], preferred_element_type=jnp.float32)
    h = jnp.maximum(h, 0.0)
    # Second Linear (bias=False) + ReLU.  (h is rounded to the weight dtype
    # before the second dot -- standard mixed-precision behaviour.)
    y = jnp.dot(h.astype(w2_ref.dtype), w2_ref[...],
                preferred_element_type=jnp.float32)
    o_ref[...] = jnp.maximum(y, 0.0).astype(o_ref.dtype)


# ----------------------------------------------------------------------------
# Tile / VMEM sizing helpers
# ----------------------------------------------------------------------------
def _physical_vmem_bytes():
    """Per-TensorCore physical VMEM; conservative 64 MiB (v7x) if unknown."""
    try:
        info = pltpu.get_tpu_info()
        v = int(getattr(info, "vmem_capacity_bytes", 0))
        if v > 0:
            return v
    except Exception:
        pass
    return 64 * _MIB


def _round_up(v, m):
    return ((v + m - 1) // m) * m


def _choose_row_tile(M, C, H, itemsize, io_budget_bytes):
    """Pick the row-tile size tM for the streaming dimension."""
    # Sublane packing: 8 rows for 4-byte, 16 for 2-byte, 32 for 1-byte dtypes.
    sublane = max(8, 32 // itemsize)
    # Target ~16 MiB of double-buffered (in + out) stream per grid step,
    # bounded by what fits in the per-generation VMEM budget.
    target_stream = min(16 * _MIB, io_budget_bytes)
    tM = target_stream // (4 * C * itemsize)          # 2 buffers x (in + out)
    # Keep the f32 hidden intermediate (tM x H) under ~4 MiB.
    if H > 0:
        tM = min(tM, (4 * _MIB) // (4 * H))
    # No point tiling past the (sublane-rounded) problem size.
    tM = min(tM, _round_up(M, sublane))
    tM = max(sublane, (tM // sublane) * sublane)
    return tM, sublane


def _build_pallas_call(tM, C, H, M_pad, out_dtype, vmem_limit, cost,
                       single_buffer_weights):
    if single_buffer_weights:
        # Weights never change across the grid -> single buffer is enough.
        w_kwargs = {"pipeline_mode": pl.Buffered(1)}
    else:
        w_kwargs = {}
    in_specs = [
        pl.BlockSpec((tM, C), lambda i: (i, 0)),              # x row tile
        pl.BlockSpec((C, H), lambda i: (0, 0), **w_kwargs),   # w1 resident
        pl.BlockSpec((H, C), lambda i: (0, 0), **w_kwargs),   # w2 resident
    ]
    return pl.pallas_call(
        _adapter_kernel,
        out_shape=jax.ShapeDtypeStruct((M_pad, C), out_dtype),
        grid_spec=pltpu.PrefetchScalarGridSpec(
            num_scalar_prefetch=0,
            grid=(M_pad // tM,),
            in_specs=in_specs,
            out_specs=pl.BlockSpec((tM, C), lambda i: (i, 0)),
        ),
        compiler_params=pltpu.CompilerParams(
            dimension_semantics=("parallel",),
            vmem_limit_bytes=int(vmem_limit),
        ),
        cost_estimate=cost,
    )


# ----------------------------------------------------------------------------
# Wrapper
# ----------------------------------------------------------------------------
def adapter_forward(x, w1, w2):
    """Adapter forward pass.

    x : (..., c_in)
    w1: (c_in, hidden)   == torch Linear1.weight.T  (hidden = c_in // reduction)
    w2: (hidden, c_in)   == torch Linear2.weight.T
    """
    orig_shape = x.shape
    C = orig_shape[-1]
    H = w1.shape[1]
    assert w1.shape == (C, H) and w2.shape == (H, C)

    w1 = w1.astype(x.dtype)
    w2 = w2.astype(x.dtype)

    # Tiny adapters (output last dim < 128 lanes): the Pallas path would be
    # lane-masked + per-step-overhead dominated; plain XLA matches or beats it.
    if C < 128:
        h = jnp.maximum(jnp.dot(x, w1, preferred_element_type=jnp.float32), 0.0)
        y = jnp.dot(h.astype(w2.dtype), w2, preferred_element_type=jnp.float32)
        return jnp.maximum(y, 0.0).astype(x.dtype)

    x2 = x.reshape(-1, C)
    M = x2.shape[0]
    itemsize = jnp.dtype(x.dtype).itemsize

    # Per-generation VMEM budget (v7x: 64 MiB physical -> stay <= ~44 MiB of
    # pipelined buffers; v5e/v6e: 128 MiB -> can push toward ~96 MiB).
    phys = _physical_vmem_bytes()
    small_vmem = phys <= 64 * _MIB
    budget_cap = (44 if small_vmem else 96) * _MIB
    vmem_limit = min((48 if small_vmem else 100) * _MIB, phys)

    # Reserve room for the resident weights (budget 2x in case the
    # single-buffer request falls back to default double buffering).
    weight_bytes = 2 * 2 * C * H * itemsize
    io_budget = max(4 * _MIB, budget_cap - weight_bytes)

    tM, sublane = _choose_row_tile(M, C, H, itemsize, io_budget)
    M_pad = _round_up(M, tM)
    if M_pad != M:
        # Zero rows pass harmlessly through relu(0 @ W); sliced off below.
        x2 = jnp.pad(x2, ((0, M_pad - M), (0, 0)))

    cost = pl.CostEstimate(
        flops=4 * M_pad * C * H,                          # two matmuls
        transcendentals=0,
        bytes_accessed=(2 * M_pad * C + 2 * C * H) * itemsize,
    )

    try:
        call = _build_pallas_call(tM, C, H, M_pad, x.dtype, vmem_limit, cost,
                                  single_buffer_weights=True)
        out = call(x2, w1, w2)
    except Exception:
        # Fallback: identical kernel without the single-buffer weight hint.
        call = _build_pallas_call(tM, C, H, M_pad, x.dtype, vmem_limit, cost,
                                  single_buffer_weights=False)
        out = call(x2, w1, w2)

    if M_pad != M:
        out = out[:M]
    return out.reshape(orig_shape)


# ----------------------------------------------------------------------------
# Demo / self-check
# ----------------------------------------------------------------------------
if __name__ == "__main__":
    key = jax.random.PRNGKey(0)
    kx, k1, k2, kx2 = jax.random.split(key, 4)

    def ref_adapter(x, w1, w2):
        x2 = x.reshape(-1, x.shape[-1])
        h = jnp.maximum(x2 @ w1, 0.0)
        y = jnp.maximum(h @ w2, 0.0)
        return y.reshape(x.shape)

    # --- Pallas path: lane-dense C = 256, reduction = 4 -> hidden = 64 ---
    batch, seq, c_in, reduction = 2, 8, 256, 4
    hidden = c_in // reduction
    x = jax.random.normal(kx, (batch, seq, c_in), dtype=jnp.float32)
    # torch Linear(c_in, hidden).weight is (hidden, c_in); we store transposes
    # so the kernel computes plain x @ w1 and h @ w2.
    w1 = jax.random.normal(k1, (c_in, hidden), dtype=jnp.float32) / np.sqrt(c_in)
    w2 = jax.random.normal(k2, (hidden, c_in), dtype=jnp.float32) / np.sqrt(hidden)

    out = jax.block_until_ready(adapter_forward(x, w1, w2))
    np.testing.assert_allclose(np.asarray(out), np.asarray(ref_adapter(x, w1, w2)),
                               rtol=1e-4, atol=1e-4)

    # --- Multi-tile grid with row padding (M not a multiple of tM) ---
    xb = jax.random.normal(kx2, (5000, c_in), dtype=jnp.float32)
    outb = jax.block_until_ready(adapter_forward(xb, w1, w2))
    np.testing.assert_allclose(np.asarray(outb), np.asarray(ref_adapter(xb, w1, w2)),
                               rtol=1e-4, atol=1e-4)

    # --- Tiny adapter (c_in < 128) takes the XLA fallback path ---
    c_s, h_s = 32, 8
    xs = jax.random.normal(kx, (batch, seq, c_s), dtype=jnp.float32)
    w1s = jax.random.normal(k1, (c_s, h_s), dtype=jnp.float32) / np.sqrt(c_s)
    w2s = jax.random.normal(k2, (h_s, c_s), dtype=jnp.float32) / np.sqrt(h_s)
    outs = jax.block_until_ready(adapter_forward(xs, w1s, w2s))
    np.testing.assert_allclose(np.asarray(outs), np.asarray(ref_adapter(xs, w1s, w2s)),
                               rtol=1e-4, atol=1e-4)

    print("KERNEL_OK")
</pallas_src>

<mosaic_0001>
module attributes {stable_mosaic.version = 11 : i64} {
  func.func @_adapter_kernel(%arg0: i32, %arg1: memref<16x256xf32, #tpu.memory_space<vmem>>, %arg2: memref<256x64xf32, #tpu.memory_space<vmem>>, %arg3: memref<64x256xf32, #tpu.memory_space<vmem>>, %arg4: memref<16x256xf32, #tpu.memory_space<vmem>>) attributes {dimension_semantics = [#tpu.dimension_semantics<parallel>], iteration_bounds = array<i64: 1>, scalar_prefetch = 0 : i64, scratch_operands = 0 : i64, tpu.core_type = #tpu.core_type<tc>, window_params = [{transform_indices = @transform_0, window_bounds = array<i64: 16, 256>}, {pipeline_mode = #tpu.pipeline_mode<synchronous>, transform_indices = @transform_1, window_bounds = array<i64: 256, 64>}, {pipeline_mode = #tpu.pipeline_mode<synchronous>, transform_indices = @transform_2, window_bounds = array<i64: 64, 256>}, {transform_indices = @transform_3, window_bounds = array<i64: 16, 256>}]} {
    %c0 = arith.constant 0 : index
    %c0_0 = arith.constant 0 : index
    %0 = vector.load %arg1[%c0, %c0_0] : memref<16x256xf32, #tpu.memory_space<vmem>>, vector<16x256xf32>
    %c0_1 = arith.constant 0 : index
    %c0_2 = arith.constant 0 : index
    %1 = vector.load %arg2[%c0_1, %c0_2] : memref<256x64xf32, #tpu.memory_space<vmem>>, vector<256x64xf32>
    %cst = arith.constant dense<0.000000e+00> : vector<16x64xf32>
    %2 = tpu.matmul %0, %1, %cst {dimension_numbers = #tpu.dot_dimension_numbers<[1], [0], [0], [1], [0, 0, 1, 1], [], []>} : vector<16x256xf32>, vector<256x64xf32>, vector<16x64xf32> -> vector<16x64xf32>
    %cst_3 = arith.constant 0.000000e+00 : f32
    %3 = vector.broadcast %cst_3 : f32 to vector<16x64xf32>
    %4 = arith.maximumf %2, %3 : vector<16x64xf32>
    %c0_4 = arith.constant 0 : index
    %c0_5 = arith.constant 0 : index
    %5 = vector.load %arg3[%c0_4, %c0_5] : memref<64x256xf32, #tpu.memory_space<vmem>>, vector<64x256xf32>
    %cst_6 = arith.constant dense<0.000000e+00> : vector<16x256xf32>
    %6 = tpu.matmul %4, %5, %cst_6 {dimension_numbers = #tpu.dot_dimension_numbers<[1], [0], [0], [1], [0, 0, 1, 1], [], []>} : vector<16x64xf32>, vector<64x256xf32>, vector<16x256xf32> -> vector<16x256xf32>
    %cst_7 = arith.constant 0.000000e+00 : f32
    %7 = vector.broadcast %cst_7 : f32 to vector<16x256xf32>
    %8 = arith.maximumf %6, %7 : vector<16x256xf32>
    %c0_8 = arith.constant 0 : index
    %c0_9 = arith.constant 0 : index
    %9 = vector.load %arg4[%c0_8, %c0_9] : memref<16x256xf32, #tpu.memory_space<vmem>>, vector<16x256xf32>
    tpu.vector_store %arg4[%c0_8, %c0_9], %8 {strides = array<i32>} : memref<16x256xf32, #tpu.memory_space<vmem>>, vector<16x256xf32>,
    return
  }
  func.func @transform_0(%arg0: i32) -> (i32, i32) {
    %c0_i32 = arith.constant 0 : i32
    %c0_i32_0 = arith.constant 0 : i32
    return %arg0, %c0_i32 : i32, i32
  }
  func.func @transform_1(%arg0: i32) -> (i32, i32) {
    %c0_i32 = arith.constant 0 : i32
    %c0_i32_0 = arith.constant 0 : i32
    %c0_i32_1 = arith.constant 0 : i32
    return %c0_i32, %c0_i32_0 : i32, i32
  }
  func.func @transform_2(%arg0: i32) -> (i32, i32) {
    %c0_i32 = arith.constant 0 : i32
    %c0_i32_0 = arith.constant 0 : i32
    %c0_i32_1 = arith.constant 0 : i32
    return %c0_i32, %c0_i32_0 : i32, i32
  }
  func.func @transform_3(%arg0: i32) -> (i32, i32) {
    %c0_i32 = arith.constant 0 : i32
    %c0_i32_0 = arith.constant 0 : i32
    return %arg0, %c0_i32 : i32, i32
  }
}

module attributes {stable_mosaic.version = 11 : i64} {
  func.func @_adapter_kernel(%arg0: i32, %arg1: memref<16x256xf32, #tpu.memory_space<vmem>>, %arg2: memref<256x64xf32, #tpu.memory_space<vmem>>, %arg3: memref<64x256xf32, #tpu.memory_space<vmem>>, %arg4: memref<16x256xf32, #tpu.memory_space<vmem>>) attributes {dimension_semantics = [#tpu.dimension_semantics<parallel>], iteration_bounds = array<i64: 1>, scalar_prefetch = 0 : i64, scratch_operands = 0 : i64, tpu.core_type = #tpu.core_type<tc>, window_params = [{transform_indices = @transform_0, window_bounds = array<i64: 16, 256>}, {pipeline_mode = #tpu.pipeline_mode<synchronous>, transform_indices = @transform_1, window_bounds = array<i64: 256, 64>}, {pipeline_mode = #tpu.pipeline_mode<synchronous>, transform_indices = @transform_2, window_bounds = array<i64: 64, 256>}, {transform_indices = @transform_3, window_bounds = array<i64: 16, 256>}]} {
    %c0 = arith.constant 0 : index
    %c0_0 = arith.constant 0 : index
    %0 = vector.load %arg1[%c0, %c0_0] : memref<16x256xf32, #tpu.memory_space<vmem>>, vector<16x256xf32>
    %c0_1 = arith.constant 0 : index
    %c0_2 = arith.constant 0 : index
    %1 = vector.load %arg2[%c0_1, %c0_2] : memref<256x64xf32, #tpu.memory_space<vmem>>, vector<256x64xf32>
    %cst = arith.constant dense<0.000000e+00> : vector<16x64xf32>
    %2 = tpu.matmul %0, %1, %cst {dimension_numbers = #tpu.dot_dimension_numbers<[1], [0], [0], [1], [0, 0, 1, 1], [], []>} : vector<16x256xf32>, vector<256x64xf32>, vector<16x64xf32> -> vector<16x64xf32>
    %cst_3 = arith.constant 0.000000e+00 : f32
    %3 = vector.broadcast %cst_3 : f32 to vector<16x64xf32>
    %4 = arith.maximumf %2, %3 : vector<16x64xf32>
    %c0_4 = arith.constant 0 : index
    %c0_5 = arith.constant 0 : index
    %5 = vector.load %arg3[%c0_4, %c0_5] : memref<64x256xf32, #tpu.memory_space<vmem>>, vector<64x256xf32>
    %cst_6 = arith.constant dense<0.000000e+00> : vector<16x256xf32>
    %6 = tpu.matmul %4, %5, %cst_6 {dimension_numbers = #tpu.dot_dimension_numbers<[1], [0], [0], [1], [0, 0, 1, 1], [], []>} : vector<16x64xf32>, vector<64x256xf32>, vector<16x256xf32> -> vector<16x256xf32>
    %cst_7 = arith.constant 0.000000e+00 : f32
    %7 = vector.broadcast %cst_7 : f32 to vector<16x256xf32>
    %8 = arith.maximumf %6, %7 : vector<16x256xf32>
    %c0_8 = arith.constant 0 : index
    %c0_9 = arith.constant 0 : index
    %9 = vector.load %arg4[%c0_8, %c0_9] : memref<16x256xf32, #tpu.memory_space<vmem>>, vector<16x256xf32>
    tpu.vector_store %arg4[%c0_8, %c0_9], %8 {strides = array<i32>} : memref<16x256xf32, #tpu.memory_space<vmem>>, vector<16x256xf32>,
    return
  }
  func.func @transform_0(%arg0: i32) -> (i32, i32) {
    %c0_i32 = arith.constant 0 : i32
    %c0_i32_0 = arith.constant 0 : i32
    return %arg0, %c0_i32 : i32, i32
  }
  func.func @transform_1(%arg0: i32) -> (i32, i32) {
    %c0_i32 = arith.constant 0 : i32
    %c0_i32_0 = arith.constant 0 : i32
    %c0_i32_1 = arith.constant 0 : i32
    return %c0_i32, %c0_i32_0 : i32, i32
  }
  func.func @transform_2(%arg0: i32) -> (i32, i32) {
    %c0_i32 = arith.constant 0 : i32
    %c0_i32_0 = arith.constant 0 : i32
    %c0_i32_1 = arith.constant 0 : i32
    return %c0_i32, %c0_i32_0 : i32, i32
  }
  func.func @transform_3(%arg0: i32) -> (i32, i32) {
    %c0_i32 = arith.constant 0 : i32
    %c0_i32_0 = arith.constant 0 : i32
    return %arg0, %c0_i32 : i32, i32
  }
}

</mosaic_0001>

<bundles_post_ra>
// kernel: tpu_custom_call.1
= control target key start
LH: loop header
LB: loop body
LE: loop exit
PB: predicated region body
PF: predicated region fallthrough
CT: control target
= control target key end

     0   :  { %s560_s0 = inlined_call_operand.vmem [shape: f32[16,256], index: 0, kind: input, shape index: {}]   ;;  %s561_s1 = inlined_call_operand.vmem [shape: f32[256,64], index: 1, kind: input, shape index: {}]   ;;  %s562_s2 = inlined_call_operand.vmem [shape: f32[64,256], index: 2, kind: input, shape index: {}]   ;;  %s563_s3 = inlined_call_operand.hbm [shape: f32[16,256], index: 3, kind: output, shape index: {}]  }
   0x1   :  { %v35_v0 = vld [vmem:[%s561_s1 + $0x80] sm:$0xff]  ;;  %v36_v1 = vld [vmem:[%s561_s1 + $0x88] sm:$0xff]  ;;  %v37_v5 = vld [vmem:[%s561_s1 + $0x90] sm:$0xff] }
   0x2   :  { %v19_v2 = vld [vmem:[%s561_s1] sm:$0xff]  ;;  %v292_v3 = vpack.c.bf16 %v36_v1, %v35_v0  ;;  %v20_v4 = vld [vmem:[%s561_s1 + $0x8] sm:$0xff]  ;;  %v38_v6 = vld [vmem:[%s561_s1 + $0x98] sm:$0xff] }
   0x3   :  { %v294_v7 = vpack.c.bf16 %v20_v4, %v19_v2  ;;  %v296_v8 = vpack.c.bf16 %v38_v6, %v37_v5  ;;  %v21_v9 = vld [vmem:[%s561_s1 + $0x10] sm:$0xff]  ;;  %v22_v10 = vld [vmem:[%s561_s1 + $0x18] sm:$0xff]  ;;  %v39_v11 = vld [vmem:[%s561_s1 + $0xa0] sm:$0xff] }
   0x4   :  { %293 = vmatprep.subr.bf16.mxu0 %v292_v3  ;;  %v40_v12 = vld [vmem:[%s561_s1 + $0xa8] sm:$0xff]  ;;  %v298_v13 = vpack.c.bf16 %v22_v10, %v21_v9  ;;  %v23_v15 = vld [vmem:[%s561_s1 + $0x20] sm:$0xff]  ;;  %v41_v17 = vld [vmem:[%s561_s1 + $0xb0] sm:$0xff] }
   0x5   :  { %295 = vmatpush3.bf16.msra.mxu0 %v294_v7  ;;  %v300_v14 = vpack.c.bf16 %v40_v12, %v39_v11  ;;  %v24_v16 = vld [vmem:[%s561_s1 + $0x28] sm:$0xff]  ;;  %v42_v18 = vld [vmem:[%s561_s1 + $0xb8] sm:$0xff]  ;;  %v25_v21 = vld [vmem:[%s561_s1 + $0x30] sm:$0xff] }
   0x6   :  { %297 = vmatprep.subr.bf16.mxu0 %v296_v8  ;;  %v302_v19 = vpack.c.bf16 %v24_v16, %v23_v15  ;;  %v304_v20 = vpack.c.bf16 %v42_v18, %v41_v17  ;;  %v26_v22 = vld [vmem:[%s561_s1 + $0x38] sm:$0xff]  ;;  %v43_v23 = vld [vmem:[%s561_s1 + $0xc0] sm:$0xff]  ;;  %v44_v24 = vld [vmem:[%s561_s1 + $0xc8] sm:$0xff] }
   0x7   :  { %v16_v25 = vld [vmem:[%s560_s0 + $0x8] sm:$0xff]  ;;  %v27_v26 = vld [vmem:[%s561_s1 + $0x40] sm:$0xff]  ;;  %v306_v28 = vpack.c.bf16 %v26_v22, %v25_v21  ;;  %v45_v29 = vld [vmem:[%s561_s1 + $0xd0] sm:$0xff]  ;;  %v308_v34 = vpack.c.bf16 %v44_v24, %v43_v23 }
   0x8   :  { %v28_v27 = vld [vmem:[%s561_s1 + $0x48] sm:$0xff]  ;;  %115 = vmatprep.mubr.f32.mxu0 %v16_v25  ;;  %v46_v30 = vld [vmem:[%s561_s1 + $0xd8] sm:$0xff]  ;;  %v128_v33 = vld [vmem:[%s562_s2] sm:$0xff] }
   0x9   :  { %299 = vmatpush3.bf16.msra.mxu0 %v298_v13  ;;  %v129_v31 = vld [vmem:[%s562_s2 + $0x8] sm:$0xff]  ;;  %v131_v32 = vld [vmem:[%s562_s2 + $0x18] sm:$0xff]  ;;  %v130_v36 = vld [vmem:[%s562_s2 + $0x10] sm:$0xff]  ;;  %v310_v45 = vpack.c.bf16 %v28_v27, %v27_v26 }
   0xa   :  { %301 = vmatprep.subr.bf16.mxu0 %v300_v14  ;;  %v324_v35 = vpack.c.bf16 %v131_v32, %v129_v31  ;;  %v133_v37 = vld [vmem:[%s562_s2 + $0x28] sm:$0xff]  ;;  %v135_v38 = vld [vmem:[%s562_s2 + $0x38] sm:$0xff]  ;;  %v326_v39 = vpack.c.bf16 %v130_v36, %v128_v33  ;;  %v132_v41 = vld [vmem:[%s562_s2 + $0x20] sm:$0xff] }
   0xb   :  { %v328_v40 = vpack.c.bf16 %v135_v38, %v133_v37  ;;  %v134_v42 = vld [vmem:[%s562_s2 + $0x30] sm:$0xff]  ;;  %v137_v43 = vld [vmem:[%s562_s2 + $0x48] sm:$0xff]  ;;  %v139_v44 = vld [vmem:[%s562_s2 + $0x58] sm:$0xff] }
   0xc   :  { %325 = vmatprep.subr.bf16.mxu1 %v324_v35  ;;  %v29_v46 = vld [vmem:[%s561_s1 + $0x50] sm:$0xff]  ;;  %v330_v47 = vpack.c.bf16 %v134_v42, %v132_v41 }
   0xd   :  { %303 = vmatpush3.bf16.msra.mxu0 %v302_v19  ;;  %327 = vmatpush1.bf16.msra.mxu1 %v326_v39 }
   0xe   :  { %305 = vmatprep.subr.bf16.mxu0 %v304_v20 }
  0x11   :  { %307 = vmatpush3.bf16.msra.mxu0 %v306_v28 }
  0x12   :  { %8 = vsyncpa [#allocation3], 0  ;;  %309 = vmatprep.subr.bf16.mxu0 %v308_v34  ;;  %v312_v48 = vpack.c.bf16 %v46_v30, %v45_v29  ;;  %v30_v49 = vld [vmem:[%s561_s1 + $0x58] sm:$0xff]  ;;  %329 = vmatprep.subr.bf16.mxu1 %v328_v40  ;;  %v332_v50 = vpack.c.bf16 %v139_v44, %v137_v43  ;;  %v136_v51 = vld [vmem:[%s562_s2 + $0x40] sm:$0xff]  ;;  %v368_v12 = vmov 0.0   ;;  %vm144_vm0 = vcmask 523264  }
  0x13   :  { %v138_v52 = vld [vmem:[%s562_s2 + $0x50] sm:$0xff]  ;;  %v47_v53 = vld [vmem:[%s561_s1 + $0xe0] sm:$0xff]  ;;  %v48_v54 = vld [vmem:[%s561_s1 + $0xe8] sm:$0xff]  ;;  %v314_v55 = vpack.c.bf16 %v30_v49, %v29_v46  ;;  %331 = vmatpush1.bf16.msra.mxu1 %v330_v47  ;;  %215 = vmatprep.mubr.f32.mxu1 %v368_v12 }
  0x14   :  { %v334_v56 = vpack.c.bf16 %v138_v52, %v136_v51  ;;  %v316_v57 = vpack.c.bf16 %v48_v54, %v47_v53  ;;  %v31_v58 = vld [vmem:[%s561_s1 + $0x60] sm:$0xff]  ;;  %v32_v59 = vld [vmem:[%s561_s1 + $0x68] sm:$0xff]  ;;  %333 = vmatprep.subr.bf16.mxu1 %v332_v50  ;;  %v49_v60 = vld [vmem:[%s561_s1 + $0xf0] sm:$0xff] }
  0x15   :  { %311 = vmatpush3.bf16.msra.mxu0 %v310_v45  ;;  %v50_v61 = vld [vmem:[%s561_s1 + $0xf8] sm:$0xff]  ;;  %v318_v62 = vpack.c.bf16 %v32_v59, %v31_v58  ;;  %v33_v0 = vld [vmem:[%s561_s1 + $0x70] sm:$0xff]  ;;  %v15_v3 = vld [vmem:[%s560_s0] sm:$0xff] }
  0x16   :  { %313 = vmatprep.subr.bf16.mxu0 %v312_v48  ;;  %v320_v63 = vpack.c.bf16 %v50_v61, %v49_v60  ;;  %v34_v1 = vld [vmem:[%s561_s1 + $0x78] sm:$0xff]  ;;  %v17_v5 = vld [vmem:[%s560_s0 + $0x10] sm:$0xff]  ;;  %v141_v6 = vld [vmem:[%s562_s2 + $0x68] sm:$0xff] }
  0x17   :  { %335 = vmatpush1.bf16.msra.mxu1 %v334_v56  ;;  %v322_v2 = vpack.c.bf16 %v34_v1, %v33_v0  ;;  %v18_v4 = vld [vmem:[%s560_s0 + $0x18] sm:$0xff]  ;;  %v140_v9 = vld [vmem:[%s562_s2 + $0x60] sm:$0xff]  ;;  %v142_v10 = vld [vmem:[%s562_s2 + $0x70] sm:$0xff]  ;;  %s369_s0 = smov [#allocation2]  }
  0x18   :  { %v143_v7 = vld [vmem:[%s562_s2 + $0x78] sm:$0xff]  ;;  %v338_v11 = vpack.c.bf16 %v142_v10, %v140_v9  ;;  %s241_s2 = sshll.u32 %s369_s0, 4  ;;  %s242_s2 = int_to_ptr.vmem [resolvable:$true] %s241_s2 }
  0x19   :  { %315 = vmatpush3.bf16.msra.mxu0 %v314_v55  ;;  %v336_v8 = vpack.c.bf16 %v143_v7, %v141_v6  ;;  %s344_s7 = scalar_lea.vmem %s242_s2, 512  ;;  %p349_p1 = scmp.lt.s32.totalorder %s242_s2, %s242_s2 }
  0x1a   :  { %317 = vmatprep.subr.bf16.mxu0 %v316_v57  ;;  %p345_p0 = scmp.ne.s32.totalorder %s242_s2, %s344_s7  ;;  %p350_p2 = scmp.lt.s32.totalorder %s344_s7, %s344_s7 }
  0x1b   :  { %337 = vmatprep.subr.bf16.mxu1 %v336_v8 }
  0x1c   :  { %339 = vmatpush1.bf16.msra.mxu1 %v338_v11  ;;  %p351_p3 = por %p350_p2, %p349_p1 }
  0x1d   :  { %319 = vmatpush3.bf16.msra.mxu0 %v318_v62 }
  0x1e   :  { %321 = vmatprep.subr.bf16.mxu0 %v320_v63  ;;  %p352_p4 = pnand %p351_p3, %p345_p0 }
  0x21   :  { %323 = vmatpush3.bf16.msra.mxu0 %v322_v2 }
  0x24   :  { %116 = vmatmul.mubr.f32.vlgmr.msra.gmra.mrb[0].mxu0 %v15_v3 }
  0x25   :  { %120 = vmatprep.mubr.f32.mxu0 %v18_v4 }
  0x28   :  { %121 = vmatmul.mubr.f32.gmra.mrb[2].mxu0 %v17_v5 }
  0xf7   :  { %v286_v13 = vpop.f32.mrb[0].mxu0 }
  0xf8   :  { %v287_v14 = vpop.f32.mrb[1].mxu0 }
  0xf9   :  { %v288_v15 = vadd.f32 %v287_v14, %v286_v13 }
  0xfb   :  { %v126_v16 = vmax.f32 %v288_v15, 0.0  ;;  %v289_v17 = vpop.f32.mrb[2].mxu0 }
  0xfc   :  { %v290_v18 = vpop.f32.mrb[3].mxu0 }
  0xfd   :  { %v291_v19 = vadd.f32 %v290_v18, %v289_v17  ;;  %252 = vmatmul.mubr.msk.f32.vlgmr.msra.gmra.mrb[0].mxu1 %vm144_vm0, %v126_v16 }
  0xfe   :  { %221 = vmatprep.mubr.f32.mxu1 %v368_v12 }
  0xff   :  { %v127_v20 = vmax.f32 %v291_v19, 0.0 }
 0x101   :  { %253 = vmatmul.mubr.msk.f32.gmra.mrb[2].mxu1 %vm144_vm0, %v127_v20 }
 0x1d0   :  { %v217_v21 = vpop.f32.mrb[0].mxu1 }
 0x1d1   :  { %v228_v22 = vmax.f32 %v217_v21, 0.0  ;;  %v219_v23 = vpop.f32.mrb[1].mxu1 }
 0x1d2   :  { %v229_v24 = vmax.f32 %v219_v23, 0.0 }
 0x1d3   :  { %232 = vst [vmem:[#allocation2] sm:$0xff] %v228_v22 }
 0x1d4   :  { %233 = vst [vmem:[#allocation2 + $0x8] sm:$0xff] %v229_v24  ;;  %v223_v25 = vpop.f32.mrb[2].mxu1 }
 0x1d5   :  { %v230_v26 = vmax.f32 %v223_v25, 0.0  ;;  %v225_v27 = vpop.f32.mrb[3].mxu1 }
 0x1d6   :  { %v231_v28 = vmax.f32 %v225_v27, 0.0 }
 0x1d7   :  { %234 = vst [vmem:[#allocation2 + $0x10] sm:$0xff] %v230_v26 }
 0x1d8   :  { %235 = vst [vmem:[#allocation2 + $0x18] sm:$0xff] %v231_v28 }
 0x1d9   :  { %355 = shalt.err (!%p352_p4)
}
 0x1da   :  { %s356_s10 = scalar_lea.hbm %s563_s3, 512 }
 0x1db   :  { %p357_p5 = scmp.ne.s32.totalorder %s563_s3, %s356_s10  ;;  %p360_p6 = scmp.lt.u32.totalorder %s356_s10, %s563_s3 }
 0x1dd   :  { %p362_p7 = pnand %p360_p6, %p357_p5 }
 0x1df   :  { %365 = shalt.err (!%p362_p7)
}
 0x1e0   :  { %s370_s15 = smov 256   ;;  %s371_s16 = smov 16  }
 0x1e1   :  { %247 = dma.vmem_to_hbm [thread:$0]  %s242_s2, 512, %s563_s3, [#allocation3], %s370_s15, %s370_s15, %s371_s16  }
 0x1e2   :  { %366 = dma.done.wait [#allocation3], 512  }
 0x1e3   :  { %367 = vsyncadd [#allocation3], 4294966784 }
 0x1e4   :  { %251 = vsyncpa [#allocation3], 1 }

// kernel: tpu_custom_call.1
= control target key start
LH: loop header
LB: loop body
LE: loop exit
PB: predicated region body
PF: predicated region fallthrough
CT: control target
= control target key end

     0   :  { %s560_s0 = inlined_call_operand.vmem [shape: f32[16,256], index: 0, kind: input, shape index: {}]   ;;  %s561_s1 = inlined_call_operand.vmem [shape: f32[256,64], index: 1, kind: input, shape index: {}]   ;;  %s562_s2 = inlined_call_operand.vmem [shape: f32[64,256], index: 2, kind: input, shape index: {}]   ;;  %s563_s3 = inlined_call_operand.hbm [shape: f32[16,256], index: 3, kind: output, shape index: {}]  }
   0x1   :  { %v35_v0 = vld [vmem:[%s561_s1 + $0x80] sm:$0xff]  ;;  %v36_v1 = vld [vmem:[%s561_s1 + $0x88] sm:$0xff]  ;;  %v37_v5 = vld [vmem:[%s561_s1 + $0x90] sm:$0xff] }
   0x2   :  { %v19_v2 = vld [vmem:[%s561_s1] sm:$0xff]  ;;  %v292_v3 = vpack.c.bf16 %v36_v1, %v35_v0  ;;  %v20_v4 = vld [vmem:[%s561_s1 + $0x8] sm:$0xff]  ;;  %v38_v6 = vld [vmem:[%s561_s1 + $0x98] sm:$0xff] }
   0x3   :  { %v294_v7 = vpack.c.bf16 %v20_v4, %v19_v2  ;;  %v296_v8 = vpack.c.bf16 %v38_v6, %v37_v5  ;;  %v21_v9 = vld [vmem:[%s561_s1 + $0x10] sm:$0xff]  ;;  %v22_v10 = vld [vmem:[%s561_s1 + $0x18] sm:$0xff]  ;;  %v39_v11 = vld [vmem:[%s561_s1 + $0xa0] sm:$0xff] }
   0x4   :  { %293 = vmatprep.subr.bf16.mxu0 %v292_v3  ;;  %v40_v12 = vld [vmem:[%s561_s1 + $0xa8] sm:$0xff]  ;;  %v298_v13 = vpack.c.bf16 %v22_v10, %v21_v9  ;;  %v23_v15 = vld [vmem:[%s561_s1 + $0x20] sm:$0xff]  ;;  %v41_v17 = vld [vmem:[%s561_s1 + $0xb0] sm:$0xff] }
   0x5   :  { %295 = vmatpush3.bf16.msra.mxu0 %v294_v7  ;;  %v300_v14 = vpack.c.bf16 %v40_v12, %v39_v11  ;;  %v24_v16 = vld [vmem:[%s561_s1 + $0x28] sm:$0xff]  ;;  %v42_v18 = vld [vmem:[%s561_s1 + $0xb8] sm:$0xff]  ;;  %v25_v21 = vld [vmem:[%s561_s1 + $0x30] sm:$0xff] }
   0x6   :  { %297 = vmatprep.subr.bf16.mxu0 %v296_v8  ;;  %v302_v19 = vpack.c.bf16 %v24_v16, %v23_v15  ;;  %v304_v20 = vpack.c.bf16 %v42_v18, %v41_v17  ;;  %v26_v22 = vld [vmem:[%s561_s1 + $0x38] sm:$0xff]  ;;  %v43_v23 = vld [vmem:[%s561_s1 + $0xc0] sm:$0xff]  ;;  %v44_v24 = vld [vmem:[%s561_s1 + $0xc8] sm:$0xff] }
   0x7   :  { %v16_v25 = vld [vmem:[%s560_s0 + $0x8] sm:$0xff]  ;;  %v27_v26 = vld [vmem:[%s561_s1 + $0x40] sm:$0xff]  ;;  %v306_v28 = vpack.c.bf16 %v26_v22, %v25_v21  ;;  %v45_v29 = vld [vmem:[%s561_s1 + $0xd0] sm:$0xff]  ;;  %v308_v34 = vpack.c.bf16 %v44_v24, %v43_v23 }
   0x8   :  { %v28_v27 = vld [vmem:[%s561_s1 + $0x48] sm:$0xff]  ;;  %115 = vmatprep.mubr.f32.mxu0 %v16_v25  ;;  %v46_v30 = vld [vmem:[%s561_s1 + $0xd8] sm:$0xff]  ;;  %v128_v33 = vld [vmem:[%s562_s2] sm:$0xff] }
   0x9   :  { %299 = vmatpush3.bf16.msra.mxu0 %v298_v13  ;;  %v129_v31 = vld [vmem:[%s562_s2 + $0x8] sm:$0xff]  ;;  %v131_v32 = vld [vmem:[%s562_s2 + $0x18] sm:$0xff]  ;;  %v130_v36 = vld [vmem:[%s562_s2 + $0x10] sm:$0xff]  ;;  %v310_v45 = vpack.c.bf16 %v28_v27, %v27_v26 }
   0xa   :  { %301 = vmatprep.subr.bf16.mxu0 %v300_v14  ;;  %v324_v35 = vpack.c.bf16 %v131_v32, %v129_v31  ;;  %v133_v37 = vld [vmem:[%s562_s2 + $0x28] sm:$0xff]  ;;  %v135_v38 = vld [vmem:[%s562_s2 + $0x38] sm:$0xff]  ;;  %v326_v39 = vpack.c.bf16 %v130_v36, %v128_v33  ;;  %v132_v41 = vld [vmem:[%s562_s2 + $0x20] sm:$0xff] }
   0xb   :  { %v328_v40 = vpack.c.bf16 %v135_v38, %v133_v37  ;;  %v134_v42 = vld [vmem:[%s562_s2 + $0x30] sm:$0xff]  ;;  %v137_v43 = vld [vmem:[%s562_s2 + $0x48] sm:$0xff]  ;;  %v139_v44 = vld [vmem:[%s562_s2 + $0x58] sm:$0xff] }
   0xc   :  { %325 = vmatprep.subr.bf16.mxu1 %v324_v35  ;;  %v29_v46 = vld [vmem:[%s561_s1 + $0x50] sm:$0xff]  ;;  %v330_v47 = vpack.c.bf16 %v134_v42, %v132_v41 }
   0xd   :  { %303 = vmatpush3.bf16.msra.mxu0 %v302_v19  ;;  %327 = vmatpush1.bf16.msra.mxu1 %v326_v39 }
   0xe   :  { %305 = vmatprep.subr.bf16.mxu0 %v304_v20 }
  0x11   :  { %307 = vmatpush3.bf16.msra.mxu0 %v306_v28 }
  0x12   :  { %8 = vsyncpa [#allocation3], 0  ;;  %309 = vmatprep.subr.bf16.mxu0 %v308_v34  ;;  %v312_v48 = vpack.c.bf16 %v46_v30, %v45_v29  ;;  %v30_v49 = vld [vmem:[%s561_s1 + $0x58] sm:$0xff]  ;;  %329 = vmatprep.subr.bf16.mxu1 %v328_v40  ;;  %v332_v50 = vpack.c.bf16 %v139_v44, %v137_v43  ;;  %v136_v51 = vld [vmem:[%s562_s2 + $0x40] sm:$0xff]  ;;  %v368_v12 = vmov 0.0   ;;  %vm144_vm0 = vcmask 523264  }
  0x13   :  { %v138_v52 = vld [vmem:[%s562_s2 + $0x50] sm:$0xff]  ;;  %v47_v53 = vld [vmem:[%s561_s1 + $0xe0] sm:$0xff]  ;;  %v48_v54 = vld [vmem:[%s561_s1 + $0xe8] sm:$0xff]  ;;  %v314_v55 = vpack.c.bf16 %v30_v49, %v29_v46  ;;  %331 = vmatpush1.bf16.msra.mxu1 %v330_v47  ;;  %215 = vmatprep.mubr.f32.mxu1 %v368_v12 }
  0x14   :  { %v334_v56 = vpack.c.bf16 %v138_v52, %v136_v51  ;;  %v316_v57 = vpack.c.bf16 %v48_v54, %v47_v53  ;;  %v31_v58 = vld [vmem:[%s561_s1 + $0x60] sm:$0xff]  ;;  %v32_v59 = vld [vmem:[%s561_s1 + $0x68] sm:$0xff]  ;;  %333 = vmatprep.subr.bf16.mxu1 %v332_v50  ;;  %v49_v60 = vld [vmem:[%s561_s1 + $0xf0] sm:$0xff] }
  0x15   :  { %311 = vmatpush3.bf16.msra.mxu0 %v310_v45  ;;  %v50_v61 = vld [vmem:[%s561_s1 + $0xf8] sm:$0xff]  ;;  %v318_v62 = vpack.c.bf16 %v32_v59, %v31_v58  ;;  %v33_v0 = vld [vmem:[%s561_s1 + $0x70] sm:$0xff]  ;;  %v15_v3 = vld [vmem:[%s560_s0] sm:$0xff] }
  0x16   :  { %313 = vmatprep.subr.bf16.mxu0 %v312_v48  ;;  %v320_v63 = vpack.c.bf16 %v50_v61, %v49_v60  ;;  %v34_v1 = vld [vmem:[%s561_s1 + $0x78] sm:$0xff]  ;;  %v17_v5 = vld [vmem:[%s560_s0 + $0x10] sm:$0xff]  ;;  %v141_v6 = vld [vmem:[%s562_s2 + $0x68] sm:$0xff] }
  0x17   :  { %335 = vmatpush1.bf16.msra.mxu1 %v334_v56  ;;  %v322_v2 = vpack.c.bf16 %v34_v1, %v33_v0  ;;  %v18_v4 = vld [vmem:[%s560_s0 + $0x18] sm:$0xff]  ;;  %v140_v9 = vld [vmem:[%s562_s2 + $0x60] sm:$0xff]  ;;  %v142_v10 = vld [vmem:[%s562_s2 + $0x70] sm:$0xff]  ;;  %s369_s0 = smov [#allocation2]  }
  0x18   :  { %v143_v7 = vld [vmem:[%s562_s2 + $0x78] sm:$0xff]  ;;  %v338_v11 = vpack.c.bf16 %v142_v10, %v140_v9  ;;  %s241_s2 = sshll.u32 %s369_s0, 4  ;;  %s242_s2 = int_to_ptr.vmem [resolvable:$true] %s241_s2 }
  0x19   :  { %315 = vmatpush3.bf16.msra.mxu0 %v314_v55  ;;  %v336_v8 = vpack.c.bf16 %v143_v7, %v141_v6  ;;  %s344_s7 = scalar_lea.vmem %s242_s2, 512  ;;  %p349_p1 = scmp.lt.s32.totalorder %s242_s2, %s242_s2 }
  0x1a   :  { %317 = vmatprep.subr.bf16.mxu0 %v316_v57  ;;  %p345_p0 = scmp.ne.s32.totalorder %s242_s2, %s344_s7  ;;  %p350_p2 = scmp.lt.s32.totalorder %s344_s7, %s344_s7 }
  0x1b   :  { %337 = vmatprep.subr.bf16.mxu1 %v336_v8 }
  0x1c   :  { %339 = vmatpush1.bf16.msra.mxu1 %v338_v11  ;;  %p351_p3 = por %p350_p2, %p349_p1 }
  0x1d   :  { %319 = vmatpush3.bf16.msra.mxu0 %v318_v62 }
  0x1e   :  { %321 = vmatprep.subr.bf16.mxu0 %v320_v63  ;;  %p352_p4 = pnand %p351_p3, %p345_p0 }
  0x21   :  { %323 = vmatpush3.bf16.msra.mxu0 %v322_v2 }
  0x24   :  { %116 = vmatmul.mubr.f32.vlgmr.msra.gmra.mrb[0].mxu0 %v15_v3 }
  0x25   :  { %120 = vmatprep.mubr.f32.mxu0 %v18_v4 }
  0x28   :  { %121 = vmatmul.mubr.f32.gmra.mrb[2].mxu0 %v17_v5 }
  0xf7   :  { %v286_v13 = vpop.f32.mrb[0].mxu0 }
  0xf8   :  { %v287_v14 = vpop.f32.mrb[1].mxu0 }
  0xf9   :  { %v288_v15 = vadd.f32 %v287_v14, %v286_v13 }
  0xfb   :  { %v126_v16 = vmax.f32 %v288_v15, 0.0  ;;  %v289_v17 = vpop.f32.mrb[2].mxu0 }
  0xfc   :  { %v290_v18 = vpop.f32.mrb[3].mxu0 }
  0xfd   :  { %v291_v19 = vadd.f32 %v290_v18, %v289_v17  ;;  %252 = vmatmul.mubr.msk.f32.vlgmr.msra.gmra.mrb[0].mxu1 %vm144_vm0, %v126_v16 }
  0xfe   :  { %221 = vmatprep.mubr.f32.mxu1 %v368_v12 }
  0xff   :  { %v127_v20 = vmax.f32 %v291_v19, 0.0 }
 0x101   :  { %253 = vmatmul.mubr.msk.f32.gmra.mrb[2].mxu1 %vm144_vm0, %v127_v20 }
 0x1d0   :  { %v217_v21 = vpop.f32.mrb[0].mxu1 }
 0x1d1   :  { %v228_v22 = vmax.f32 %v217_v21, 0.0  ;;  %v219_v23 = vpop.f32.mrb[1].mxu1 }
 0x1d2   :  { %v229_v24 = vmax.f32 %v219_v23, 0.0 }
 0x1d3   :  { %232 = vst [vmem:[#allocation2] sm:$0xff] %v228_v22 }
 0x1d4   :  { %233 = vst [vmem:[#allocation2 + $0x8] sm:$0xff] %v229_v24  ;;  %v223_v25 = vpop.f32.mrb[2].mxu1 }
 0x1d5   :  { %v230_v26 = vmax.f32 %v223_v25, 0.0  ;;  %v225_v27 = vpop.f32.mrb[3].mxu1 }
 0x1d6   :  { %v231_v28 = vmax.f32 %v225_v27, 0.0 }
 0x1d7   :  { %234 = vst [vmem:[#allocation2 + $0x10] sm:$0xff] %v230_v26 }
 0x1d8   :  { %235 = vst [vmem:[#allocation2 + $0x18] sm:$0xff] %v231_v28 }
 0x1d9   :  { %355 = shalt.err (!%p352_p4)
}
 0x1da   :  { %s356_s10 = scalar_lea.hbm %s563_s3, 512 }
 0x1db   :  { %p357_p5 = scmp.ne.s32.totalorder %s563_s3, %s356_s10  ;;  %p360_p6 = scmp.lt.u32.totalorder %s356_s10, %s563_s3 }
 0x1dd   :  { %p362_p7 = pnand %p360_p6, %p357_p5 }
 0x1df   :  { %365 = shalt.err (!%p362_p7)
}
 0x1e0   :  { %s370_s15 = smov 256   ;;  %s371_s16 = smov 16  }
 0x1e1   :  { %247 = dma.vmem_to_hbm [thread:$0]  %s242_s2, 512, %s563_s3, [#allocation3], %s370_s15, %s370_s15, %s371_s16  }
 0x1e2   :  { %366 = dma.done.wait [#allocation3], 512  }
 0x1e3   :  { %367 = vsyncadd [#allocation3], 4294966784 }
 0x1e4   :  { %251 = vsyncpa [#allocation3], 1 }

</bundles_post_ra>
